<compile_context>
chip_gen: v5e
topology: v5e:2x2
jax: 0.10.0
libtpu: 0.0.40
codegen_flags: <defaults>
</compile_context>

<pallas_src>
import numpy as np
import jax
import jax.numpy as jnp
from jax.experimental import pallas as pl
from jax.experimental.pallas import tpu as pltpu


_LANES = 128
_SUBLANES = 8
_NEG_BIG = -1e30  # softmax-neutral pad; finite so x - max never produces NaN


def _round_up(x, m):
    return (x + m - 1) // m * m


def _make_maps(height: int, width: int):
    """Deterministic coordinate maps, identical to the torch __init__."""
    x_map = np.empty([height, width], np.float32)
    for i in range(height):
        for j in range(width):
            x_map[i, j] = (i - height / 2.0) / height
    x_flat = np.array(x_map.reshape(-1), np.float32)
    # Reference module (buggy but reproduced): y_map is also built from x_map.
    y_flat = np.array(x_map.reshape(-1), np.float32)
    return jnp.asarray(x_flat), jnp.asarray(y_flat)


def _spatial_softmax_kernel(x_ref, maps_ref, out_ref):
    # x_ref:    (tm, Np)   rows = flattened (batch, channel), Np = pad128(H*W)
    # maps_ref: (Np, 128)  col0 = x_map, col1 = y_map, col2 = ones (pads zeroed)
    # out_ref:  (tm, 128)  lane-dense slab; col0 = fp_x, col1 = fp_y
    x = x_ref[...]
    m = jnp.max(x, axis=-1, keepdims=True)
    e = jnp.exp(x - m)
    # One MXU matmul produces both weighted sums and the softmax denominator;
    # the (tm, Np) softmax tensor is never materialized.
    r = jnp.dot(e, maps_ref[...], preferred_element_type=jnp.float32)
    inv_denom = pl.reciprocal(r[:, 2:3], approx=False)   # (tm, 1), O(tm) work
    out_ref[...] = r * inv_denom


def _choose_tm(rows, n_pad, vmem_budget_bytes=16 * 1024 * 1024):
    """Largest row tile (multiple of 8) whose double-buffered tiles fit VMEM."""
    fixed = 2 * n_pad * _LANES * 4                 # constant maps buffers
    per_row = 2 * 4 * (n_pad + _LANES)             # x tile + output slab, x2 buffers
    cap = ((vmem_budget_bytes - fixed) // per_row) // _SUBLANES * _SUBLANES
    cap = max(_SUBLANES, min(cap, 1024))
    rows8 = _round_up(rows, _SUBLANES)
    if rows8 > _SUBLANES:
        # keep >= 2 grid steps so both v7x TensorCores get work (parallel axis)
        cap = min(cap, max(_SUBLANES, _round_up(pl.cdiv(rows8, 2), _SUBLANES)))
    return min(cap, rows8)


def spatial_softmax(x, x_map, y_map):
    """x: (B, C, H, W) float32 -> (B, 2*C) float32 (matches torch forward)."""
    B, C, H, W = x.shape
    N = H * W
    BC = B * C

    n_pad = _round_up(N, _LANES)
    x2d = x.reshape(BC, N).astype(jnp.float32)
    if n_pad > N:
        # Pad spatial axis with a softmax-neutral value (exp -> 0).
        x2d = jnp.pad(x2d, ((0, 0), (0, n_pad - N)), constant_values=_NEG_BIG)

    tm = _choose_tm(BC, n_pad)
    bc_pad = _round_up(BC, tm)
    if bc_pad > BC:
        # Padded rows are plain zeros (finite, harmless) and sliced off below.
        x2d = jnp.pad(x2d, ((0, bc_pad - BC), (0, 0)), constant_values=0.0)

    # Constant reduction matrix: columns [x_map, y_map, ones, 0...].
    maps = jnp.zeros((n_pad, _LANES), jnp.float32)
    maps = maps.at[:N, 0].set(x_map.reshape(-1).astype(jnp.float32))
    maps = maps.at[:N, 1].set(y_map.reshape(-1).astype(jnp.float32))
    maps = maps.at[:N, 2].set(1.0)

    out = pl.pallas_call(
        _spatial_softmax_kernel,
        out_shape=jax.ShapeDtypeStruct((bc_pad, _LANES), jnp.float32),
        grid_spec=pltpu.PrefetchScalarGridSpec(
            num_scalar_prefetch=0,
            grid=(bc_pad // tm,),
            in_specs=[
                pl.BlockSpec((tm, n_pad), lambda i: (i, 0)),
                pl.BlockSpec((n_pad, _LANES), lambda i: (0, 0)),
            ],
            out_specs=pl.BlockSpec((tm, _LANES), lambda i: (i, 0)),
        ),
        compiler_params=pltpu.CompilerParams(
            dimension_semantics=("parallel",),
            vmem_limit_bytes=32 * 1024 * 1024,
        ),
    )(x2d, maps)

    fp_x = out[:BC, 0].reshape(B, C)
    fp_y = out[:BC, 1].reshape(B, C)
    return jnp.concatenate([fp_x, fp_y], axis=1)   # (B, 2*C)


def _reference(x, x_map, y_map):
    B, C, H, W = x.shape
    xf = x.reshape(B, C, H * W)
    p = jax.nn.softmax(xf, axis=2)
    fp_x = p @ x_map
    fp_y = p @ y_map
    return jnp.concatenate([fp_x, fp_y], axis=1)


if __name__ == "__main__":
    B, C, H, W = 2, 4, 16, 16
    key = jax.random.PRNGKey(0)
    x = jax.random.normal(key, (B, C, H, W), dtype=jnp.float32)

    x_map, y_map = _make_maps(H, W)

    out = spatial_softmax(x, x_map, y_map)
    out = jax.block_until_ready(out)

    ref = _reference(x, x_map, y_map)
    np.testing.assert_allclose(np.asarray(out), np.asarray(ref),
                               rtol=1e-5, atol=1e-5)
    assert out.shape == (B, 2 * C)
    print("KERNEL_OK")
</pallas_src>

<mosaic_0001>
module attributes {stable_mosaic.version = 11 : i64} {
  func.func @_spatial_softmax_kernel(%arg0: i32, %arg1: memref<8x256xf32, #tpu.memory_space<vmem>>, %arg2: memref<256x128xf32, #tpu.memory_space<vmem>>, %arg3: memref<8x128xf32, #tpu.memory_space<vmem>>) attributes {dimension_semantics = [#tpu.dimension_semantics<parallel>], iteration_bounds = array<i64: 1>, scalar_prefetch = 0 : i64, scratch_operands = 0 : i64, tpu.core_type = #tpu.core_type<tc>, window_params = [{transform_indices = @transform_0, window_bounds = array<i64: 8, 256>}, {pipeline_mode = #tpu.pipeline_mode<synchronous>, transform_indices = @transform_1, window_bounds = array<i64: 256, 128>}, {transform_indices = @transform_2, window_bounds = array<i64: 8, 128>}]} {
    %c0 = arith.constant 0 : index
    %c0_0 = arith.constant 0 : index
    %0 = vector.load %arg1[%c0, %c0_0] : memref<8x256xf32, #tpu.memory_space<vmem>>, vector<8x256xf32>
    %cst = arith.constant dense<0xFF800000> : vector<8xf32>
    %1 = vector.multi_reduction <maximumf>, %0, %cst [1] : vector<8x256xf32> to vector<8xf32>
    %2 = vector.shape_cast %1 : vector<8xf32> to vector<8x1xf32>
    %3 = vector.broadcast %2 : vector<8x1xf32> to vector<8x256xf32>
    %4 = arith.subf %0, %3 : vector<8x256xf32>
    %5 = math.exp %4 : vector<8x256xf32>
    %c0_1 = arith.constant 0 : index
    %c0_2 = arith.constant 0 : index
    %6 = vector.load %arg2[%c0_1, %c0_2] : memref<256x128xf32, #tpu.memory_space<vmem>>, vector<256x128xf32>
    %cst_3 = arith.constant dense<0.000000e+00> : vector<8x128xf32>
    %7 = tpu.matmul %5, %6, %cst_3 {dimension_numbers = #tpu.dot_dimension_numbers<[1], [0], [0], [1], [0, 0, 1, 1], [], []>} : vector<8x256xf32>, vector<256x128xf32>, vector<8x128xf32> -> vector<8x128xf32>
    %8 = vector.extract_strided_slice %7 {offsets = [0, 2], sizes = [8, 1], strides = [1, 1]} : vector<8x128xf32> to vector<8x1xf32>
    %9 = tpu.reciprocal %8 : vector<8x1xf32> -> vector<8x1xf32>
    %10 = vector.broadcast %9 : vector<8x1xf32> to vector<8x128xf32>
    %11 = arith.mulf %7, %10 : vector<8x128xf32>
    %c0_4 = arith.constant 0 : index
    %c0_5 = arith.constant 0 : index
    %12 = vector.load %arg3[%c0_4, %c0_5] : memref<8x128xf32, #tpu.memory_space<vmem>>, vector<8x128xf32>
    tpu.vector_store %arg3[%c0_4, %c0_5], %11 {strides = array<i32>} : memref<8x128xf32, #tpu.memory_space<vmem>>, vector<8x128xf32>,
    return
  }
  func.func @transform_0(%arg0: i32) -> (i32, i32) {
    %c0_i32 = arith.constant 0 : i32
    %c0_i32_0 = arith.constant 0 : i32
    return %arg0, %c0_i32 : i32, i32
  }
  func.func @transform_1(%arg0: i32) -> (i32, i32) {
    %c0_i32 = arith.constant 0 : i32
    %c0_i32_0 = arith.constant 0 : i32
    %c0_i32_1 = arith.constant 0 : i32
    return %c0_i32, %c0_i32_0 : i32, i32
  }
  func.func @transform_2(%arg0: i32) -> (i32, i32) {
    %c0_i32 = arith.constant 0 : i32
    %c0_i32_0 = arith.constant 0 : i32
    return %arg0, %c0_i32 : i32, i32
  }
}

</mosaic_0001>

<bundles_post_ra>
// kernel: tpu_custom_call.1
= control target key start
LH: loop header
LB: loop body
LE: loop exit
PB: predicated region body
PF: predicated region fallthrough
CT: control target
= control target key end

     0   :  { %7 = vsyncpa [#allocation3], 0  ;;  %s293_s0 = inlined_call_operand.hbm [shape: f32[8,256], index: 0, kind: input, shape index: {}]   ;;  %s294_s1 = inlined_call_operand.hbm [shape: f32[256,128], index: 1, kind: input, shape index: {}]   ;;  %s295_s2 = inlined_call_operand.hbm [shape: f32[8,128], index: 2, kind: output, shape index: {}]  }
   0x1   :  { %8 = vsyncpa [#allocation6], 0 }
   0x2   :  { %9 = vsyncpa [#allocation4], 0  ;;  %s15_s11 = sshll.u32 %s293_s0, 4  ;;  %s255_s12 = smov [#allocation2]   ;;  %s16_s11 = int_to_ptr.hbm [resolvable:$true] %s15_s11 }
   0x3   :  { %s17_s13 = sshll.u32 %s255_s12, 4  ;;  %s25_s16 = sshll.u32 %s294_s1, 4  ;;  %s18_s13 = int_to_ptr.vmem [resolvable:$true] %s17_s13  ;;  %s26_s16 = int_to_ptr.hbm [resolvable:$true] %s25_s16 }
   0x4   :  { %20 = dma.hbm_to_vmem [thread:$0]  %s16_s11, 256, %s18_s13, [#allocation3]  }
   0x5   :  { %s256_s17 = smov [#allocation5]   ;;  %s257_s19 = smov 128  }
   0x6   :  { %s27_s18 = sshll.u32 %s256_s17, 4  ;;  %s258_s20 = smov 8   ;;  %s28_s18 = int_to_ptr.vmem [resolvable:$true] %s27_s18 }
   0x7   :  { %33 = dma.hbm_to_vmem [thread:$0]  %s26_s16, 4096, %s28_s18, [#allocation6], %s257_s19, %s257_s19, %s258_s20  }
   0x8   :  { %249 = dma.done.wait [#allocation3], 256  }
   0x9   :  { %250 = vsyncadd [#allocation3], 4294967040 }
   0xa   :  { %251 = dma.done.wait [#allocation6], 4096  }
   0xb   :  { %252 = vsyncadd [#allocation6], 4294963200  ;;  %v282_v0 = vld [vmem:[#allocation2] sm:$0xff]  ;;  %v284_v1 = vld [vmem:[#allocation2 + $0x8] sm:$0xff]  ;;  %v259_v42 = vmov 2   ;;  %s260_s0 = smov [#allocation7]  }
   0xc   :  { %v68_v2 = vld [vmem:[#allocation5 + $0x78] sm:$0xff]  ;;  %v44_v3 = vmax.f32 %v282_v0, %v284_v1  ;;  %v67_v5 = vld [vmem:[#allocation5 + $0x70] sm:$0xff]  ;;  %v66_v7 = vld [vmem:[#allocation5 + $0x68] sm:$0xff]  ;;  %170 = vset.pattern.permute.xlu0 %v259_v42  ;;  %s151_s1 = sshll.u32 %s260_s0, 4  ;;  %s153_s23 = sshll.u32 %s295_s2, 4  ;;  %s152_s1 = int_to_ptr.vmem [resolvable:$true] %s151_s1  ;;  %s154_s23 = int_to_ptr.hbm [resolvable:$true] %s153_s23 }
   0xd   :  { %85 = vmatpush.msra.mxu0 %v68_v2  ;;  %v84_v4 = vld [vmem:[#allocation5 + $0xf8] sm:$0xff]  ;;  %v83_v6 = vld [vmem:[#allocation5 + $0xf0] sm:$0xff]  ;;  %v82_v8 = vld [vmem:[#allocation5 + $0xe8] sm:$0xff] }
   0xe   :  { %105 = vmatpush.msra.mxu1 %v84_v4  ;;  %45 = vmax.xlane.f32.xlu0 %v44_v3  ;;  %v65_v9 = vld [vmem:[#allocation5 + $0x60] sm:$0xff]  ;;  %v64_v11 = vld [vmem:[#allocation5 + $0x58] sm:$0xff]  ;;  %v63_v13 = vld [vmem:[#allocation5 + $0x50] sm:$0xff] }
   0xf   :  { %86 = vmatpush.msra.mxu0 %v67_v5  ;;  %v81_v10 = vld [vmem:[#allocation5 + $0xe0] sm:$0xff]  ;;  %v80_v12 = vld [vmem:[#allocation5 + $0xd8] sm:$0xff]  ;;  %v79_v14 = vld [vmem:[#allocation5 + $0xd0] sm:$0xff] }
  0x10   :  { %106 = vmatpush.msra.mxu1 %v83_v6  ;;  %v62_v15 = vld [vmem:[#allocation5 + $0x48] sm:$0xff]  ;;  %v61_v17 = vld [vmem:[#allocation5 + $0x40] sm:$0xff]  ;;  %v60_v19 = vld [vmem:[#allocation5 + $0x38] sm:$0xff] }
  0x11   :  { %87 = vmatpush.msra.mxu0 %v66_v7  ;;  %v78_v16 = vld [vmem:[#allocation5 + $0xc8] sm:$0xff]  ;;  %v77_v18 = vld [vmem:[#allocation5 + $0xc0] sm:$0xff]  ;;  %v76_v20 = vld [vmem:[#allocation5 + $0xb8] sm:$0xff] }
  0x12   :  { %107 = vmatpush.msra.mxu1 %v82_v8  ;;  %v59_v21 = vld [vmem:[#allocation5 + $0x30] sm:$0xff]  ;;  %v58_v23 = vld [vmem:[#allocation5 + $0x28] sm:$0xff]  ;;  %v57_v25 = vld [vmem:[#allocation5 + $0x20] sm:$0xff] }
  0x13   :  { %88 = vmatpush.msra.mxu0 %v65_v9  ;;  %v75_v22 = vld [vmem:[#allocation5 + $0xb0] sm:$0xff]  ;;  %v74_v24 = vld [vmem:[#allocation5 + $0xa8] sm:$0xff]  ;;  %v73_v26 = vld [vmem:[#allocation5 + $0xa0] sm:$0xff] }
  0x14   :  { %108 = vmatpush.msra.mxu1 %v81_v10  ;;  %v56_v27 = vld [vmem:[#allocation5 + $0x18] sm:$0xff]  ;;  %v55_v29 = vld [vmem:[#allocation5 + $0x10] sm:$0xff]  ;;  %v54_v31 = vld [vmem:[#allocation5 + $0x8] sm:$0xff] }
  0x15   :  { %89 = vmatpush.msra.mxu0 %v64_v11  ;;  %v72_v28 = vld [vmem:[#allocation5 + $0x98] sm:$0xff]  ;;  %v71_v30 = vld [vmem:[#allocation5 + $0x90] sm:$0xff]  ;;  %v70_v32 = vld [vmem:[#allocation5 + $0x88] sm:$0xff] }
  0x16   :  { %109 = vmatpush.msra.mxu1 %v80_v12  ;;  %v53_v33 = vld [vmem:[#allocation5] sm:$0xff] }
  0x17   :  { %90 = vmatpush.msra.mxu0 %v63_v13  ;;  %v69_v34 = vld [vmem:[#allocation5 + $0x80] sm:$0xff] }
  0x18   :  { %110 = vmatpush.msra.mxu1 %v79_v14 }
  0x19   :  { %91 = vmatpush.msra.mxu0 %v62_v15 }
  0x1a   :  { %111 = vmatpush.msra.mxu1 %v78_v16 }
  0x1b   :  { %92 = vmatpush.msra.mxu0 %v61_v17 }
  0x1c   :  { %112 = vmatpush.msra.mxu1 %v77_v18 }
  0x1d   :  { %93 = vmatpush.msra.mxu0 %v60_v19 }
  0x1e   :  { %113 = vmatpush.msra.mxu1 %v76_v20 }
  0x1f   :  { %94 = vmatpush.msra.mxu0 %v59_v21 }
  0x20   :  { %114 = vmatpush.msra.mxu1 %v75_v22 }
  0x21   :  { %95 = vmatpush.msra.mxu0 %v58_v23 }
  0x22   :  { %115 = vmatpush.msra.mxu1 %v74_v24 }
  0x23   :  { %96 = vmatpush.msra.mxu0 %v57_v25 }
  0x24   :  { %116 = vmatpush.msra.mxu1 %v73_v26 }
  0x25   :  { %97 = vmatpush.msra.mxu0 %v56_v27 }
  0x26   :  { %117 = vmatpush.msra.mxu1 %v72_v28 }
  0x27   :  { %98 = vmatpush.msra.mxu0 %v55_v29 }
  0x28   :  { %118 = vmatpush.msra.mxu1 %v71_v30 }
  0x29   :  { %99 = vmatpush.msra.mxu0 %v54_v31 }
  0x2a   :  { %119 = vmatpush.msra.mxu1 %v70_v32 }
  0x2b   :  { %100 = vmatpush.msra.mxu0 %v53_v33 }
  0x2c   :  { %120 = vmatpush.msra.mxu1 %v69_v34 }
  0x81   :  { %v46_v35 = vpop.xlane.xlu0 %45 }
  0x82   :  { %v47_v36 = vsub.f32 %v282_v0, %v46_v35  ;;  %v48_v37 = vsub.f32 %v284_v1, %v46_v35 }
  0x84   :  { %v49_v38 = vmul.f32 1.442695, %v47_v36  ;;  %v51_v39 = vmul.f32 1.442695, %v48_v37 }
  0x86   :  { %171 = vpow2.f32 %v49_v38 }
  0x87   :  { %173 = vpow2.f32 %v51_v39 }
  0x8c   :  { %v172_v40 = vpop.eup %171 }
  0x8d   :  { %v174_v41 = vpop.eup %173  ;;  %101 = vmatmul.f32.vlgmr.msra.gmra.mxu0 %v172_v40 }
  0x8e   :  { %121 = vmatmul.f32.vlgmr.msra.gmra.mxu1 %v174_v41 }
 0x10a   :  { %v102_v43 = vpop.f32.mrf.mxu0 }
 0x10b   :  { %v122_v44 = vpop.f32.mrf.mxu1 }
 0x10c   :  { %v123_v45 = vadd.f32 %v122_v44, %v102_v43 }
 0x10e   :  { %175 = vrcp.f32 %v123_v45  ;;  %v136_v49 = vand.u32 2147483648, %v123_v45  ;;  %v134_v51 = vand.u32 2147483647, %v123_v45  ;;  %vm130_vm1 = vweird.f32 %v123_v45 }
 0x110   :  { %v137_v53 = vor.u32 1.1754944e-38, %v136_v49  ;;  %vm135_vm3 = vcmp.eq.f32.partialorder %v134_v51, 8.507059e+37 }
 0x114   :  { %v176_v46 = vpop.eup %175 }
 0x115   :  { %v126_v47 = vmul.f32 %v176_v46, %v123_v45  ;;  %vm131_vm0 = vweird.f32 %v176_v46 }
 0x116   :  { %vm132_vm2 = vmor %vm130_vm1, %vm131_vm0 }
 0x117   :  { %v127_v48 = vsub.f32 1.0, %v126_v47 }
 0x119   :  { %v128_v50 = vmul.f32 %v176_v46, %v127_v48 }
 0x11b   :  { %v129_v52 = vadd.f32 %v176_v46, %v128_v50 }
 0x11d   :  { %v133_v54 = vsel %vm132_vm2, %v176_v46, %v129_v52 }
 0x11e   :  { %v138_v55 = vsel %vm135_vm3, %v137_v53, %v133_v54 }
 0x11f   :  { %141 = vperm.xlu0 %170, %v138_v55  }
 0x191   :  { %v142_v56 = vpop.permute.xlu0 %141 }
 0x192   :  { %v144_v57 = vmul.f32 %v142_v56, %v123_v45 }
 0x194   :  { %145 = vst [vmem:[#allocation7] sm:$0xff] %v144_v57 }
 0x195   :  { %156 = dma.vmem_to_hbm [thread:$0]  %s152_s1, 128, %s154_s23, [#allocation4]  }
 0x196   :  { %253 = dma.done.wait [#allocation4], 128  }
 0x197   :  { %254 = vsyncadd [#allocation4], 4294967168 }
 0x198   :  { %161 = vsyncpa [#allocation3], 1 }
 0x199   :  { %162 = vsyncpa [#allocation6], 1 }
 0x19a   :  { %163 = vsyncpa [#allocation4], 1 }

</bundles_post_ra>
